<compile_context>
chip_gen: v5e
topology: v5e:2x2
jax: 0.10.0
libtpu: 0.0.40
codegen_flags: <defaults>
</compile_context>

<pallas_src>
import functools

import jax
import jax.numpy as jnp
from jax.experimental import pallas as pl
from jax.experimental.pallas import tpu as pltpu


# ---------------------------------------------------------------------------
# Pallas kernel: dual GRU encoder (batch-stacked) + bilinear score, fused.
# ---------------------------------------------------------------------------
def dual_encoder_kernel(x_ref, wi_ref, wh_ref, bi_ref, bhn_ref, m_ref, b_ref,
                        o_ref, *, T, B2):
    """Fused forward.

    x_ref:   (T*B2, E) bf16  time-major embedded inputs; row t*B2 + b.
                             Rows [0:B) of each time block are x1, [B:B2) x2.
    wi_ref:  (E, 3H)  bf16   input->gate weights, columns [r | z | n].
    wh_ref:  (H, 3H)  bf16   hidden->gate weights, columns [r | z | n].
    bi_ref:  (1, 3H)  f32    folded biases: [b_ir+b_hr | b_iz+b_hz | b_in].
    bhn_ref: (1, H)   f32    b_hn (must stay inside r * (W_hn h + b_hn)).
    m_ref:   (H, H)   bf16   bilinear M.
    b_ref:   (1,)     f32    scalar bias b (SMEM).
    o_ref:   (1, B)   f32    output scores, batch on lanes.
    """
    H = wh_ref.shape[0]
    B = B2 // 2

    # ---- hoisted input projection: ONE wide batched matmul ------------------
    gi = jnp.dot(x_ref[...], wi_ref[...],
                 preferred_element_type=jnp.float32) + bi_ref[...]   # (T*B2, 3H) f32

    w_h = wh_ref[...]                                    # (H, 3H) bf16, hoisted
    b_hn = jnp.broadcast_to(bhn_ref[...], (B2, H))       # hoisted broadcast (f32)

    # ---- recurrence: only the true h(t-1) -> h(t) dependency remains --------
    h = jnp.zeros((B2, H), dtype=jnp.float32)
    for t in range(T):                        # T static & small -> full unroll
        row = t * B2
        gh = jnp.dot(h.astype(jnp.bfloat16), w_h,
                     preferred_element_type=jnp.float32)             # (B2, 3H)
        gi_t = gi[row:row + B2]                                      # (B2, 3H)
        rz = jax.nn.sigmoid(gi_t[:, :2 * H] + gh[:, :2 * H])         # one sigmoid, 2H lanes
        r = rz[:, :H]
        z = rz[:, H:]
        n = jnp.tanh(gi_t[:, 2 * H:] + r * (gh[:, 2 * H:] + b_hn))
        h = (1.0 - z) * n + z * h

    # ---- fused bilinear score, lane-dense output -----------------------------
    # o[b] = c[b] @ M @ r[b]^T + b.  Compute (c M) @ r^T on the MXU (this also
    # moves the per-batch results onto lanes) and mask out the diagonal.
    c = h[:B]                                                        # encoder of x1
    r_enc = h[B:]                                                    # encoder of x2
    cm = jnp.dot(c.astype(jnp.bfloat16), m_ref[...],
                 preferred_element_type=jnp.float32)                 # (B, H)
    prod = jax.lax.dot_general(cm, r_enc, (((1,), (1,)), ((), ())),
                               preferred_element_type=jnp.float32)   # (B, B) = cm @ r^T
    rows = jax.lax.broadcasted_iota(jnp.int32, (B, B), 0)
    cols = jax.lax.broadcasted_iota(jnp.int32, (B, B), 1)
    diag = jnp.where(rows == cols, prod, 0.0)
    o_ref[...] = jnp.sum(diag, axis=0, keepdims=True) + b_ref[0]     # (1, B)


# ---------------------------------------------------------------------------
# Wrapper
# ---------------------------------------------------------------------------
def run_dual_encoder(x2d, T, B2, w_i3, w_h3, b_i3, b_hn, M, b):
    B = B2 // 2
    E = x2d.shape[1]
    H = w_h3.shape[0]

    # Advisory cost estimate for XLA's scheduler.
    flops = (2 * T * B2 * E * 3 * H          # input projection
             + 2 * T * B2 * H * 3 * H        # hidden recurrence matmuls
             + 10 * T * B2 * 3 * H           # gate elementwise math
             + 2 * B * H * H + 2 * B * B * H)  # bilinear score
    transcendentals = T * B2 * 3 * H         # 2H sigmoid + H tanh per row/step
    bytes_accessed = (x2d.size * 2 + w_i3.size * 2 + w_h3.size * 2
                      + b_i3.size * 4 + b_hn.size * 4 + M.size * 2
                      + b.size * 4 + B * 4)

    kernel = functools.partial(dual_encoder_kernel, T=T, B2=B2)
    vmem = pl.BlockSpec(memory_space=pltpu.MemorySpace.VMEM)
    smem = pl.BlockSpec(memory_space=pltpu.MemorySpace.SMEM)
    out = pl.pallas_call(
        kernel,
        out_shape=jax.ShapeDtypeStruct((1, B), jnp.float32),
        in_specs=[vmem, vmem, vmem, vmem, vmem, vmem, smem],
        out_specs=vmem,
        cost_estimate=pl.CostEstimate(flops=int(flops),
                                      transcendentals=int(transcendentals),
                                      bytes_accessed=int(bytes_accessed)),
    )(x2d, w_i3, w_h3, b_i3, b_hn, M, b)
    return out.reshape(-1)


class GRUDualEncoderPallas:
    """Inference-time equivalent of the PyTorch GRUDualEncoder (z_dim=None)."""

    def __init__(self, emb_dim, n_vocab, h_dim=32, pad_idx=0, seed=0):
        self.emb_dim = emb_dim
        self.n_vocab = n_vocab
        self.h_dim = h_dim
        self.pad_idx = pad_idx

        key = jax.random.PRNGKey(seed)
        k_emb, k_wih, k_whh, k_m = jax.random.split(key, 4)
        H = h_dim

        # Embedding table, padding row zeroed (padding_idx semantics).
        emb = 0.1 * jax.random.normal(k_emb, (n_vocab, emb_dim), jnp.float32)
        self.emb = emb.at[pad_idx].set(0.0)

        # GRU params (PyTorch layout: weight_ih (3H,E), weight_hh (3H,H),
        # gate order r,z,n).  Transposed -> (E,3H)/(H,3H) so the kernel issues
        # ONE wide matmul per input-projection / per recurrence step.
        scale = 1.0 / jnp.sqrt(h_dim)
        w_ih = scale * jax.random.normal(k_wih, (3 * H, emb_dim), jnp.float32)
        w_hh = scale * jax.random.normal(k_whh, (3 * H, H), jnp.float32)
        self.w_i3 = jnp.transpose(w_ih).astype(jnp.bfloat16)   # (E, 3H)
        self.w_h3 = jnp.transpose(w_hh).astype(jnp.bfloat16)   # (H, 3H)

        # init_params_: bias_{ih,hh}[size//4 : size//2] = 2, mirrored literally
        # (with 3H this straddles the r/z gate blocks, as in the PyTorch code).
        size = 3 * H
        b_base = jnp.zeros((size,), jnp.float32).at[size // 4: size // 2].set(2.0)
        b_ih, b_hh = b_base, b_base
        # Fold biases once: r/z gates see (b_ih + b_hh), the n gate keeps only
        # b_ih in the precompute; b_hh_n stays separate (inside r * (.)).
        self.b_i3 = jnp.concatenate(
            [b_ih[:2 * H] + b_hh[:2 * H], b_ih[2 * H:]]).reshape(1, 3 * H)
        self.b_hn = b_hh[2 * H:].reshape(1, H)

        # M: xavier-normal-like init; b: scalar 0 (kept in SMEM by the kernel).
        self.M = (jax.random.normal(k_m, (H, H), jnp.float32)
                  * jnp.sqrt(2.0 / (H + H))).astype(jnp.bfloat16)
        self.b = jnp.zeros((1,), jnp.float32)

    def forward(self, x1, x2):
        B, T = x1.shape
        # XLA glue: one gather for both sequences (emb_drop is identity at
        # eval), time-major, batch-stacked so a single fused kernel runs both
        # encoders plus the bilinear fc.
        # TODO(synk): with a time grid the transpose/reshape moves into the
        #             kernel's BlockSpec index_map for free.
        ids = jnp.concatenate([x1, x2], axis=0)            # (2B, T)
        x_emb = self.emb[ids]                              # (2B, T, E)
        x_tbe = jnp.transpose(x_emb, (1, 0, 2))            # (T, 2B, E)
        x2d = x_tbe.reshape(T * 2 * B, self.emb_dim).astype(jnp.bfloat16)
        return run_dual_encoder(
            x2d, T, 2 * B,
            self.w_i3, self.w_h3, self.b_i3, self.b_hn,
            self.M, self.b)                                # (B,)


if __name__ == "__main__":
    B, T, E, H, V = 2, 8, 32, 32, 50

    model = GRUDualEncoderPallas(emb_dim=E, n_vocab=V, h_dim=H, pad_idx=0, seed=0)

    key = jax.random.PRNGKey(0)
    k1, k2 = jax.random.split(key)
    x1 = jax.random.randint(k1, (B, T), 0, V, dtype=jnp.int32)
    x2 = jax.random.randint(k2, (B, T), 0, V, dtype=jnp.int32)

    o = model.forward(x1, x2)
    jax.block_until_ready(o)
    assert o.shape == (B,), o.shape
    print("KERNEL_OK")
</pallas_src>

<mosaic_0001>
module attributes {stable_mosaic.version = 11 : i64} {
  func.func @dual_encoder_kernel(%arg0: memref<32x32xbf16, #tpu.memory_space<vmem>>, %arg1: memref<32x96xbf16, #tpu.memory_space<vmem>>, %arg2: memref<32x96xbf16, #tpu.memory_space<vmem>>, %arg3: memref<1x96xf32, #tpu.memory_space<vmem>>, %arg4: memref<1x32xf32, #tpu.memory_space<vmem>>, %arg5: memref<32x32xbf16, #tpu.memory_space<vmem>>, %arg6: memref<1xf32, #tpu.memory_space<smem>>, %arg7: memref<1x2xf32, #tpu.memory_space<vmem>>) attributes {dimension_semantics = [], scalar_prefetch = 0 : i64, scratch_operands = 0 : i64, tpu.core_type = #tpu.core_type<tc>} {
    %c0 = arith.constant 0 : index
    %c0_0 = arith.constant 0 : index
    %0 = vector.load %arg0[%c0, %c0_0] : memref<32x32xbf16, #tpu.memory_space<vmem>>, vector<32x32xbf16>
    %c0_1 = arith.constant 0 : index
    %c0_2 = arith.constant 0 : index
    %1 = vector.load %arg1[%c0_1, %c0_2] : memref<32x96xbf16, #tpu.memory_space<vmem>>, vector<32x96xbf16>
    %cst = arith.constant dense<0.000000e+00> : vector<32x96xf32>
    %2 = tpu.matmul %0, %1, %cst {dimension_numbers = #tpu.dot_dimension_numbers<[1], [0], [0], [1], [0, 0, 1, 1], [], []>} : vector<32x32xbf16>, vector<32x96xbf16>, vector<32x96xf32> -> vector<32x96xf32>
    %c0_3 = arith.constant 0 : index
    %c0_4 = arith.constant 0 : index
    %3 = vector.load %arg3[%c0_3, %c0_4] : memref<1x96xf32, #tpu.memory_space<vmem>>, vector<1x96xf32>
    %4 = vector.broadcast %3 : vector<1x96xf32> to vector<32x96xf32>
    %5 = arith.addf %2, %4 : vector<32x96xf32>
    %c0_5 = arith.constant 0 : index
    %c0_6 = arith.constant 0 : index
    %6 = vector.load %arg2[%c0_5, %c0_6] : memref<32x96xbf16, #tpu.memory_space<vmem>>, vector<32x96xbf16>
    %c0_7 = arith.constant 0 : index
    %c0_8 = arith.constant 0 : index
    %7 = vector.load %arg4[%c0_7, %c0_8] : memref<1x32xf32, #tpu.memory_space<vmem>>, vector<1x32xf32>
    %8 = vector.shape_cast %7 : vector<1x32xf32> to vector<1x32xf32>
    %9 = vector.broadcast %8 : vector<1x32xf32> to vector<4x32xf32>
    %cst_9 = arith.constant 0.000000e+00 : f32
    %10 = vector.broadcast %cst_9 : f32 to vector<4x32xf32>
    %11 = arith.truncf %10 : vector<4x32xf32> to vector<4x32xbf16>
    %cst_10 = arith.constant dense<0.000000e+00> : vector<4x96xf32>
    %12 = tpu.matmul %11, %6, %cst_10 {dimension_numbers = #tpu.dot_dimension_numbers<[1], [0], [0], [1], [0, 0, 1, 1], [], []>} : vector<4x32xbf16>, vector<32x96xbf16>, vector<4x96xf32> -> vector<4x96xf32>
    %13 = vector.extract_strided_slice %5 {offsets = [0, 0], sizes = [4, 96], strides = [1, 1]} : vector<32x96xf32> to vector<4x96xf32>
    %14 = vector.extract_strided_slice %13 {offsets = [0, 0], sizes = [4, 64], strides = [1, 1]} : vector<4x96xf32> to vector<4x64xf32>
    %15 = vector.extract_strided_slice %12 {offsets = [0, 0], sizes = [4, 64], strides = [1, 1]} : vector<4x96xf32> to vector<4x64xf32>
    %16 = arith.addf %14, %15 : vector<4x64xf32>
    %17 = arith.negf %16 : vector<4x64xf32>
    %18 = math.exp %17 : vector<4x64xf32>
    %cst_11 = arith.constant 1.000000e+00 : f32
    %19 = vector.broadcast %cst_11 : f32 to vector<4x64xf32>
    %20 = arith.addf %19, %18 : vector<4x64xf32>
    %21 = arith.divf %19, %20 : vector<4x64xf32>
    %22 = vector.extract_strided_slice %21 {offsets = [0, 0], sizes = [4, 32], strides = [1, 1]} : vector<4x64xf32> to vector<4x32xf32>
    %23 = vector.extract_strided_slice %21 {offsets = [0, 32], sizes = [4, 32], strides = [1, 1]} : vector<4x64xf32> to vector<4x32xf32>
    %24 = vector.extract_strided_slice %13 {offsets = [0, 64], sizes = [4, 32], strides = [1, 1]} : vector<4x96xf32> to vector<4x32xf32>
    %25 = vector.extract_strided_slice %12 {offsets = [0, 64], sizes = [4, 32], strides = [1, 1]} : vector<4x96xf32> to vector<4x32xf32>
    %26 = arith.addf %25, %9 : vector<4x32xf32>
    %27 = arith.mulf %22, %26 : vector<4x32xf32>
    %28 = arith.addf %24, %27 : vector<4x32xf32>
    %29 = math.tanh %28 : vector<4x32xf32>
    %cst_12 = arith.constant 1.000000e+00 : f32
    %30 = vector.broadcast %cst_12 : f32 to vector<4x32xf32>
    %31 = arith.subf %30, %23 : vector<4x32xf32>
    %32 = arith.mulf %31, %29 : vector<4x32xf32>
    %33 = arith.mulf %23, %10 : vector<4x32xf32>
    %34 = arith.addf %32, %33 : vector<4x32xf32>
    %35 = arith.truncf %34 : vector<4x32xf32> to vector<4x32xbf16>
    %cst_13 = arith.constant dense<0.000000e+00> : vector<4x96xf32>
    %36 = tpu.matmul %35, %6, %cst_13 {dimension_numbers = #tpu.dot_dimension_numbers<[1], [0], [0], [1], [0, 0, 1, 1], [], []>} : vector<4x32xbf16>, vector<32x96xbf16>, vector<4x96xf32> -> vector<4x96xf32>
    %37 = vector.extract_strided_slice %5 {offsets = [4, 0], sizes = [4, 96], strides = [1, 1]} : vector<32x96xf32> to vector<4x96xf32>
    %38 = vector.extract_strided_slice %37 {offsets = [0, 0], sizes = [4, 64], strides = [1, 1]} : vector<4x96xf32> to vector<4x64xf32>
    %39 = vector.extract_strided_slice %36 {offsets = [0, 0], sizes = [4, 64], strides = [1, 1]} : vector<4x96xf32> to vector<4x64xf32>
    %40 = arith.addf %38, %39 : vector<4x64xf32>
    %41 = arith.negf %40 : vector<4x64xf32>
    %42 = math.exp %41 : vector<4x64xf32>
    %cst_14 = arith.constant 1.000000e+00 : f32
    %43 = vector.broadcast %cst_14 : f32 to vector<4x64xf32>
    %44 = arith.addf %43, %42 : vector<4x64xf32>
    %45 = arith.divf %43, %44 : vector<4x64xf32>
    %46 = vector.extract_strided_slice %45 {offsets = [0, 0], sizes = [4, 32], strides = [1, 1]} : vector<4x64xf32> to vector<4x32xf32>
    %47 = vector.extract_strided_slice %45 {offsets = [0, 32], sizes = [4, 32], strides = [1, 1]} : vector<4x64xf32> to vector<4x32xf32>
    %48 = vector.extract_strided_slice %37 {offsets = [0, 64], sizes = [4, 32], strides = [1, 1]} : vector<4x96xf32> to vector<4x32xf32>
    %49 = vector.extract_strided_slice %36 {offsets = [0, 64], sizes = [4, 32], strides = [1, 1]} : vector<4x96xf32> to vector<4x32xf32>
    %50 = arith.addf %49, %9 : vector<4x32xf32>
    %51 = arith.mulf %46, %50 : vector<4x32xf32>
    %52 = arith.addf %48, %51 : vector<4x32xf32>
    %53 = math.tanh %52 : vector<4x32xf32>
    %cst_15 = arith.constant 1.000000e+00 : f32
    %54 = vector.broadcast %cst_15 : f32 to vector<4x32xf32>
    %55 = arith.subf %54, %47 : vector<4x32xf32>
    %56 = arith.mulf %55, %53 : vector<4x32xf32>
    %57 = arith.mulf %47, %34 : vector<4x32xf32>
    %58 = arith.addf %56, %57 : vector<4x32xf32>
    %59 = arith.truncf %58 : vector<4x32xf32> to vector<4x32xbf16>
    %cst_16 = arith.constant dense<0.000000e+00> : vector<4x96xf32>
    %60 = tpu.matmul %59, %6, %cst_16 {dimension_numbers = #tpu.dot_dimension_numbers<[1], [0], [0], [1], [0, 0, 1, 1], [], []>} : vector<4x32xbf16>, vector<32x96xbf16>, vector<4x96xf32> -> vector<4x96xf32>
    %61 = vector.extract_strided_slice %5 {offsets = [8, 0], sizes = [4, 96], strides = [1, 1]} : vector<32x96xf32> to vector<4x96xf32>
    %62 = vector.extract_strided_slice %61 {offsets = [0, 0], sizes = [4, 64], strides = [1, 1]} : vector<4x96xf32> to vector<4x64xf32>
    %63 = vector.extract_strided_slice %60 {offsets = [0, 0], sizes = [4, 64], strides = [1, 1]} : vector<4x96xf32> to vector<4x64xf32>
    %64 = arith.addf %62, %63 : vector<4x64xf32>
    %65 = arith.negf %64 : vector<4x64xf32>
    %66 = math.exp %65 : vector<4x64xf32>
    %cst_17 = arith.constant 1.000000e+00 : f32
    %67 = vector.broadcast %cst_17 : f32 to vector<4x64xf32>
    %68 = arith.addf %67, %66 : vector<4x64xf32>
    %69 = arith.divf %67, %68 : vector<4x64xf32>
    %70 = vector.extract_strided_slice %69 {offsets = [0, 0], sizes = [4, 32], strides = [1, 1]} : vector<4x64xf32> to vector<4x32xf32>
    %71 = vector.extract_strided_slice %69 {offsets = [0, 32], sizes = [4, 32], strides = [1, 1]} : vector<4x64xf32> to vector<4x32xf32>
    %72 = vector.extract_strided_slice %61 {offsets = [0, 64], sizes = [4, 32], strides = [1, 1]} : vector<4x96xf32> to vector<4x32xf32>
    %73 = vector.extract_strided_slice %60 {offsets = [0, 64], sizes = [4, 32], strides = [1, 1]} : vector<4x96xf32> to vector<4x32xf32>
    %74 = arith.addf %73, %9 : vector<4x32xf32>
    %75 = arith.mulf %70, %74 : vector<4x32xf32>
    %76 = arith.addf %72, %75 : vector<4x32xf32>
    %77 = math.tanh %76 : vector<4x32xf32>
    %cst_18 = arith.constant 1.000000e+00 : f32
    %78 = vector.broadcast %cst_18 : f32 to vector<4x32xf32>
    %79 = arith.subf %78, %71 : vector<4x32xf32>
    %80 = arith.mulf %79, %77 : vector<4x32xf32>
    %81 = arith.mulf %71, %58 : vector<4x32xf32>
    %82 = arith.addf %80, %81 : vector<4x32xf32>
    %83 = arith.truncf %82 : vector<4x32xf32> to vector<4x32xbf16>
    %cst_19 = arith.constant dense<0.000000e+00> : vector<4x96xf32>
    %84 = tpu.matmul %83, %6, %cst_19 {dimension_numbers = #tpu.dot_dimension_numbers<[1], [0], [0], [1], [0, 0, 1, 1], [], []>} : vector<4x32xbf16>, vector<32x96xbf16>, vector<4x96xf32> -> vector<4x96xf32>
    %85 = vector.extract_strided_slice %5 {offsets = [12, 0], sizes = [4, 96], strides = [1, 1]} : vector<32x96xf32> to vector<4x96xf32>
    %86 = vector.extract_strided_slice %85 {offsets = [0, 0], sizes = [4, 64], strides = [1, 1]} : vector<4x96xf32> to vector<4x64xf32>
    %87 = vector.extract_strided_slice %84 {offsets = [0, 0], sizes = [4, 64], strides = [1, 1]} : vector<4x96xf32> to vector<4x64xf32>
    %88 = arith.addf %86, %87 : vector<4x64xf32>
    %89 = arith.negf %88 : vector<4x64xf32>
    %90 = math.exp %89 : vector<4x64xf32>
    %cst_20 = arith.constant 1.000000e+00 : f32
    %91 = vector.broadcast %cst_20 : f32 to vector<4x64xf32>
    %92 = arith.addf %91, %90 : vector<4x64xf32>
    %93 = arith.divf %91, %92 : vector<4x64xf32>
    %94 = vector.extract_strided_slice %93 {offsets = [0, 0], sizes = [4, 32], strides = [1, 1]} : vector<4x64xf32> to vector<4x32xf32>
    %95 = vector.extract_strided_slice %93 {offsets = [0, 32], sizes = [4, 32], strides = [1, 1]} : vector<4x64xf32> to vector<4x32xf32>
    %96 = vector.extract_strided_slice %85 {offsets = [0, 64], sizes = [4, 32], strides = [1, 1]} : vector<4x96xf32> to vector<4x32xf32>
    %97 = vector.extract_strided_slice %84 {offsets = [0, 64], sizes = [4, 32], strides = [1, 1]} : vector<4x96xf32> to vector<4x32xf32>
    %98 = arith.addf %97, %9 : vector<4x32xf32>
    %99 = arith.mulf %94, %98 : vector<4x32xf32>
    %100 = arith.addf %96, %99 : vector<4x32xf32>
    %101 = math.tanh %100 : vector<4x32xf32>
    %cst_21 = arith.constant 1.000000e+00 : f32
    %102 = vector.broadcast %cst_21 : f32 to vector<4x32xf32>
    %103 = arith.subf %102, %95 : vector<4x32xf32>
    %104 = arith.mulf %103, %101 : vector<4x32xf32>
    %105 = arith.mulf %95, %82 : vector<4x32xf32>
    %106 = arith.addf %104, %105 : vector<4x32xf32>
    %107 = arith.truncf %106 : vector<4x32xf32> to vector<4x32xbf16>
    %cst_22 = arith.constant dense<0.000000e+00> : vector<4x96xf32>
    %108 = tpu.matmul %107, %6, %cst_22 {dimension_numbers = #tpu.dot_dimension_numbers<[1], [0], [0], [1], [0, 0, 1, 1], [], []>} : vector<4x32xbf16>, vector<32x96xbf16>, vector<4x96xf32> -> vector<4x96xf32>
    %109 = vector.extract_strided_slice %5 {offsets = [16, 0], sizes = [4, 96], strides = [1, 1]} : vector<32x96xf32> to vector<4x96xf32>
    %110 = vector.extract_strided_slice %109 {offsets = [0, 0], sizes = [4, 64], strides = [1, 1]} : vector<4x96xf32> to vector<4x64xf32>
    %111 = vector.extract_strided_slice %108 {offsets = [0, 0], sizes = [4, 64], strides = [1, 1]} : vector<4x96xf32> to vector<4x64xf32>
    %112 = arith.addf %110, %111 : vector<4x64xf32>
    %113 = arith.negf %112 : vector<4x64xf32>
    %114 = math.exp %113 : vector<4x64xf32>
    %cst_23 = arith.constant 1.000000e+00 : f32
    %115 = vector.broadcast %cst_23 : f32 to vector<4x64xf32>
    %116 = arith.addf %115, %114 : vector<4x64xf32>
    %117 = arith.divf %115, %116 : vector<4x64xf32>
    %118 = vector.extract_strided_slice %117 {offsets = [0, 0], sizes = [4, 32], strides = [1, 1]} : vector<4x64xf32> to vector<4x32xf32>
    %119 = vector.extract_strided_slice %117 {offsets = [0, 32], sizes = [4, 32], strides = [1, 1]} : vector<4x64xf32> to vector<4x32xf32>
    %120 = vector.extract_strided_slice %109 {offsets = [0, 64], sizes = [4, 32], strides = [1, 1]} : vector<4x96xf32> to vector<4x32xf32>
    %121 = vector.extract_strided_slice %108 {offsets = [0, 64], sizes = [4, 32], strides = [1, 1]} : vector<4x96xf32> to vector<4x32xf32>
    %122 = arith.addf %121, %9 : vector<4x32xf32>
    %123 = arith.mulf %118, %122 : vector<4x32xf32>
    %124 = arith.addf %120, %123 : vector<4x32xf32>
    %125 = math.tanh %124 : vector<4x32xf32>
    %cst_24 = arith.constant 1.000000e+00 : f32
    %126 = vector.broadcast %cst_24 : f32 to vector<4x32xf32>
    %127 = arith.subf %126, %119 : vector<4x32xf32>
    %128 = arith.mulf %127, %125 : vector<4x32xf32>
    %129 = arith.mulf %119, %106 : vector<4x32xf32>
    %130 = arith.addf %128, %129 : vector<4x32xf32>
    %131 = arith.truncf %130 : vector<4x32xf32> to vector<4x32xbf16>
    %cst_25 = arith.constant dense<0.000000e+00> : vector<4x96xf32>
    %132 = tpu.matmul %131, %6, %cst_25 {dimension_numbers = #tpu.dot_dimension_numbers<[1], [0], [0], [1], [0, 0, 1, 1], [], []>} : vector<4x32xbf16>, vector<32x96xbf16>, vector<4x96xf32> -> vector<4x96xf32>
    %133 = vector.extract_strided_slice %5 {offsets = [20, 0], sizes = [4, 96], strides = [1, 1]} : vector<32x96xf32> to vector<4x96xf32>
    %134 = vector.extract_strided_slice %133 {offsets = [0, 0], sizes = [4, 64], strides = [1, 1]} : vector<4x96xf32> to vector<4x64xf32>
    %135 = vector.extract_strided_slice %132 {offsets = [0, 0], sizes = [4, 64], strides = [1, 1]} : vector<4x96xf32> to vector<4x64xf32>
    %136 = arith.addf %134, %135 : vector<4x64xf32>
    %137 = arith.negf %136 : vector<4x64xf32>
    %138 = math.exp %137 : vector<4x64xf32>
    %cst_26 = arith.constant 1.000000e+00 : f32
    %139 = vector.broadcast %cst_26 : f32 to vector<4x64xf32>
    %140 = arith.addf %139, %138 : vector<4x64xf32>
    %141 = arith.divf %139, %140 : vector<4x64xf32>
    %142 = vector.extract_strided_slice %141 {offsets = [0, 0], sizes = [4, 32], strides = [1, 1]} : vector<4x64xf32> to vector<4x32xf32>
    %143 = vector.extract_strided_slice %141 {offsets = [0, 32], sizes = [4, 32], strides = [1, 1]} : vector<4x64xf32> to vector<4x32xf32>
    %144 = vector.extract_strided_slice %133 {offsets = [0, 64], sizes = [4, 32], strides = [1, 1]} : vector<4x96xf32> to vector<4x32xf32>
    %145 = vector.extract_strided_slice %132 {offsets = [0, 64], sizes = [4, 32], strides = [1, 1]} : vector<4x96xf32> to vector<4x32xf32>
    %146 = arith.addf %145, %9 : vector<4x32xf32>
    %147 = arith.mulf %142, %146 : vector<4x32xf32>
    %148 = arith.addf %144, %147 : vector<4x32xf32>
    %149 = math.tanh %148 : vector<4x32xf32>
    %cst_27 = arith.constant 1.000000e+00 : f32
    %150 = vector.broadcast %cst_27 : f32 to vector<4x32xf32>
    %151 = arith.subf %150, %143 : vector<4x32xf32>
    %152 = arith.mulf %151, %149 : vector<4x32xf32>
    %153 = arith.mulf %143, %130 : vector<4x32xf32>
    %154 = arith.addf %152, %153 : vector<4x32xf32>
    %155 = arith.truncf %154 : vector<4x32xf32> to vector<4x32xbf16>
    %cst_28 = arith.constant dense<0.000000e+00> : vector<4x96xf32>
    %156 = tpu.matmul %155, %6, %cst_28 {dimension_numbers = #tpu.dot_dimension_numbers<[1], [0], [0], [1], [0, 0, 1, 1], [], []>} : vector<4x32xbf16>, vector<32x96xbf16>, vector<4x96xf32> -> vector<4x96xf32>
    %157 = vector.extract_strided_slice %5 {offsets = [24, 0], sizes = [4, 96], strides = [1, 1]} : vector<32x96xf32> to vector<4x96xf32>
    %158 = vector.extract_strided_slice %157 {offsets = [0, 0], sizes = [4, 64], strides = [1, 1]} : vector<4x96xf32> to vector<4x64xf32>
    %159 = vector.extract_strided_slice %156 {offsets = [0, 0], sizes = [4, 64], strides = [1, 1]} : vector<4x96xf32> to vector<4x64xf32>
    %160 = arith.addf %158, %159 : vector<4x64xf32>
    %161 = arith.negf %160 : vector<4x64xf32>
    %162 = math.exp %161 : vector<4x64xf32>
    %cst_29 = arith.constant 1.000000e+00 : f32
    %163 = vector.broadcast %cst_29 : f32 to vector<4x64xf32>
    %164 = arith.addf %163, %162 : vector<4x64xf32>
    %165 = arith.divf %163, %164 : vector<4x64xf32>
    %166 = vector.extract_strided_slice %165 {offsets = [0, 0], sizes = [4, 32], strides = [1, 1]} : vector<4x64xf32> to vector<4x32xf32>
    %167 = vector.extract_strided_slice %165 {offsets = [0, 32], sizes = [4, 32], strides = [1, 1]} : vector<4x64xf32> to vector<4x32xf32>
    %168 = vector.extract_strided_slice %157 {offsets = [0, 64], sizes = [4, 32], strides = [1, 1]} : vector<4x96xf32> to vector<4x32xf32>
    %169 = vector.extract_strided_slice %156 {offsets = [0, 64], sizes = [4, 32], strides = [1, 1]} : vector<4x96xf32> to vector<4x32xf32>
    %170 = arith.addf %169, %9 : vector<4x32xf32>
    %171 = arith.mulf %166, %170 : vector<4x32xf32>
    %172 = arith.addf %168, %171 : vector<4x32xf32>
    %173 = math.tanh %172 : vector<4x32xf32>
    %cst_30 = arith.constant 1.000000e+00 : f32
    %174 = vector.broadcast %cst_30 : f32 to vector<4x32xf32>
    %175 = arith.subf %174, %167 : vector<4x32xf32>
    %176 = arith.mulf %175, %173 : vector<4x32xf32>
    %177 = arith.mulf %167, %154 : vector<4x32xf32>
    %178 = arith.addf %176, %177 : vector<4x32xf32>
    %179 = arith.truncf %178 : vector<4x32xf32> to vector<4x32xbf16>
    %cst_31 = arith.constant dense<0.000000e+00> : vector<4x96xf32>
    %180 = tpu.matmul %179, %6, %cst_31 {dimension_numbers = #tpu.dot_dimension_numbers<[1], [0], [0], [1], [0, 0, 1, 1], [], []>} : vector<4x32xbf16>, vector<32x96xbf16>, vector<4x96xf32> -> vector<4x96xf32>
    %181 = vector.extract_strided_slice %5 {offsets = [28, 0], sizes = [4, 96], strides = [1, 1]} : vector<32x96xf32> to vector<4x96xf32>
    %182 = vector.extract_strided_slice %181 {offsets = [0, 0], sizes = [4, 64], strides = [1, 1]} : vector<4x96xf32> to vector<4x64xf32>
    %183 = vector.extract_strided_slice %180 {offsets = [0, 0], sizes = [4, 64], strides = [1, 1]} : vector<4x96xf32> to vector<4x64xf32>
    %184 = arith.addf %182, %183 : vector<4x64xf32>
    %185 = arith.negf %184 : vector<4x64xf32>
    %186 = math.exp %185 : vector<4x64xf32>
    %cst_32 = arith.constant 1.000000e+00 : f32
    %187 = vector.broadcast %cst_32 : f32 to vector<4x64xf32>
    %188 = arith.addf %187, %186 : vector<4x64xf32>
    %189 = arith.divf %187, %188 : vector<4x64xf32>
    %190 = vector.extract_strided_slice %189 {offsets = [0, 0], sizes = [4, 32], strides = [1, 1]} : vector<4x64xf32> to vector<4x32xf32>
    %191 = vector.extract_strided_slice %189 {offsets = [0, 32], sizes = [4, 32], strides = [1, 1]} : vector<4x64xf32> to vector<4x32xf32>
    %192 = vector.extract_strided_slice %181 {offsets = [0, 64], sizes = [4, 32], strides = [1, 1]} : vector<4x96xf32> to vector<4x32xf32>
    %193 = vector.extract_strided_slice %180 {offsets = [0, 64], sizes = [4, 32], strides = [1, 1]} : vector<4x96xf32> to vector<4x32xf32>
    %194 = arith.addf %193, %9 : vector<4x32xf32>
    %195 = arith.mulf %190, %194 : vector<4x32xf32>
    %196 = arith.addf %192, %195 : vector<4x32xf32>
    %197 = math.tanh %196 : vector<4x32xf32>
    %cst_33 = arith.constant 1.000000e+00 : f32
    %198 = vector.broadcast %cst_33 : f32 to vector<4x32xf32>
    %199 = arith.subf %198, %191 : vector<4x32xf32>
    %200 = arith.mulf %199, %197 : vector<4x32xf32>
    %201 = arith.mulf %191, %178 : vector<4x32xf32>
    %202 = arith.addf %200, %201 : vector<4x32xf32>
    %203 = vector.extract_strided_slice %202 {offsets = [0, 0], sizes = [2, 32], strides = [1, 1]} : vector<4x32xf32> to vector<2x32xf32>
    %204 = vector.extract_strided_slice %202 {offsets = [2, 0], sizes = [2, 32], strides = [1, 1]} : vector<4x32xf32> to vector<2x32xf32>
    %205 = arith.truncf %203 : vector<2x32xf32> to vector<2x32xbf16>
    %c0_34 = arith.constant 0 : index
    %c0_35 = arith.constant 0 : index
    %206 = vector.load %arg5[%c0_34, %c0_35] : memref<32x32xbf16, #tpu.memory_space<vmem>>, vector<32x32xbf16>
    %cst_36 = arith.constant dense<0.000000e+00> : vector<2x32xf32>
    %207 = tpu.matmul %205, %206, %cst_36 {dimension_numbers = #tpu.dot_dimension_numbers<[1], [0], [0], [1], [0, 0, 1, 1], [], []>} : vector<2x32xbf16>, vector<32x32xbf16>, vector<2x32xf32> -> vector<2x32xf32>
    %cst_37 = arith.constant dense<0.000000e+00> : vector<2x2xf32>
    %208 = tpu.matmul %207, %204, %cst_37 {dimension_numbers = #tpu.dot_dimension_numbers<[1], [1], [0], [0], [0, 0, 1, 0], [], []>} : vector<2x32xf32>, vector<2x32xf32>, vector<2x2xf32> -> vector<2x2xf32>
    %209 = tpu.iota {dimensions = array<i32: 0>} : vector<2x2xi32>
    %210 = tpu.iota {dimensions = array<i32: 1>} : vector<2x2xi32>
    %211 = arith.cmpi eq, %209, %210 : vector<2x2xi32>
    %cst_38 = arith.constant 0.000000e+00 : f32
    %212 = vector.broadcast %cst_38 : f32 to vector<2x2xf32>
    %213 = arith.select %211, %208, %212 : vector<2x2xi1>, vector<2x2xf32>
    %cst_39 = arith.constant dense<0.000000e+00> : vector<2xf32>
    %214 = vector.multi_reduction <add>, %213, %cst_39 [0] : vector<2x2xf32> to vector<2xf32>
    %215 = vector.shape_cast %214 : vector<2xf32> to vector<1x2xf32>
    %c0_40 = arith.constant 0 : index
    %216 = memref.load %arg6[%c0_40] : memref<1xf32, #tpu.memory_space<smem>>
    %217 = vector.broadcast %216 : f32 to vector<1x2xf32>
    %218 = arith.addf %215, %217 : vector<1x2xf32>
    %c0_41 = arith.constant 0 : index
    %c0_42 = arith.constant 0 : index
    %219 = vector.load %arg7[%c0_41, %c0_42] : memref<1x2xf32, #tpu.memory_space<vmem>>, vector<1x2xf32>
    tpu.vector_store %arg7[%c0_41, %c0_42], %218 {strides = array<i32>} : memref<1x2xf32, #tpu.memory_space<vmem>>, vector<1x2xf32>,
    return
  }
}

</mosaic_0001>

<bundles_post_ra>
// kernel: tpu_custom_call.1
= control target key start
LH: loop header
LB: loop body
LE: loop exit
PB: predicated region body
PF: predicated region fallthrough
CT: control target
= control target key end

     0   :  { %13 = vsyncpa [#allocation4], 0  ;;  %s1208_s0 = inlined_call_operand.hbm [shape: bf16[32,32], index: 0, kind: input, shape index: {}]   ;;  %s1209_s1 = inlined_call_operand.hbm [shape: bf16[32,96], index: 1, kind: input, shape index: {}]   ;;  %s1210_s2 = inlined_call_operand.hbm [shape: bf16[32,96], index: 2, kind: input, shape index: {}]   ;;  %s1211_s3 = inlined_call_operand.vmem [shape: f32[1,96], index: 3, kind: input, shape index: {}]   ;;  %s1212_s4 = inlined_call_operand.vmem [shape: f32[1,32], index: 4, kind: input, shape index: {}]   ;;  %s1213_s5 = inlined_call_operand.hbm [shape: bf16[32,32], index: 5, kind: input, shape index: {}]   ;;  %s1214_s6 = inlined_call_operand.<no memory space> [shape: f32[1], index: 6, kind: input, shape index: {}]   ;;  %s1215_s7 = inlined_call_operand.hbm [shape: f32[1,2], index: 7, kind: output, shape index: {}]  }
   0x1   :  { %14 = vsyncpa [#allocation7], 0 }
   0x2   :  { %15 = vsyncpa [#allocation10], 0 }
   0x3   :  { %16 = vsyncpa [#allocation5], 0  ;;  %s34_s26 = sshll.u32 %s1209_s1, 4  ;;  %s1041_s27 = smov [#allocation6]   ;;  %s35_s26 = int_to_ptr.hbm [resolvable:$true] %s34_s26 }
   0x4   :  { %s36_s28 = sshll.u32 %s1041_s27, 4  ;;  %s21_s8 = sshll.u32 %s1208_s0, 4  ;;  %s37_s28 = int_to_ptr.vmem [resolvable:$true] %s36_s28  ;;  %s22_s8 = int_to_ptr.hbm [resolvable:$true] %s21_s8 }
   0x5   :  { %s1042_s9 = smov 64   ;;  %s1043_s10 = smov 4  }
   0x6   :  { %42 = dma.hbm_to_vmem [thread:$0]  %s35_s26, 256, %s37_s28, [#allocation7], %s1042_s9, %s1042_s9, %s1043_s10  }
   0x7   :  { %s1044_s11 = smov [#allocation3]   ;;  %s47_s1 = sshll.u32 %s1210_s2, 4  ;;  %s48_s1 = int_to_ptr.hbm [resolvable:$true] %s47_s1 }
   0x8   :  { %s23_s12 = sshll.u32 %s1044_s11, 4  ;;  %s64_s0 = sshll.u32 %s1213_s5, 4  ;;  %s24_s12 = int_to_ptr.vmem [resolvable:$true] %s23_s12  ;;  %s65_s0 = int_to_ptr.hbm [resolvable:$true] %s64_s0 }
   0x9   :  { %29 = dma.hbm_to_vmem [thread:$0]  %s22_s8, 256, %s24_s12, [#allocation4], %s1042_s9, %s1042_s9, %s1043_s10  }
   0xa   :  { %s1045_s17 = smov [#allocation8]   ;;  %s1046_s19 = smov [#allocation9]  }
   0xb   :  { %s49_s18 = sshll.u32 %s1045_s17, 4  ;;  %s66_s20 = sshll.u32 %s1046_s19, 4  ;;  %s50_s18 = int_to_ptr.vmem [resolvable:$true] %s49_s18  ;;  %s67_s20 = int_to_ptr.vmem [resolvable:$true] %s66_s20 }
   0xc   :  { %55 = dma.hbm_to_vmem [thread:$0]  %s48_s1, 256, %s50_s18, [#allocation7], %s1042_s9, %s1042_s9, %s1043_s10  }
   0xd   :  { %72 = dma.hbm_to_vmem [thread:$0]  %s65_s0, 256, %s67_s20, [#allocation10], %s1042_s9, %s1042_s9, %s1043_s10  }
   0xe   :  { %1033 = dma.done.wait [#allocation4], 256  }
   0xf   :  { %1034 = vsyncadd [#allocation4], 4294967040 }
  0x10   :  { %1035 = dma.done.wait [#allocation7], 512  }
  0x11   :  { %1036 = vsyncadd [#allocation7], 4294966784 }
  0x12   :  { %1037 = dma.done.wait [#allocation10], 256  }
  0x13   :  { %1038 = vsyncadd [#allocation10], 4294967040  ;;  %v849_v0 = vld [vmem:[#allocation6 + $0x8] sm:$0xff]  ;;  %v851_v1 = vld [vmem:[#allocation8 + $0x8] sm:$0xff]  ;;  %vm126_vm0 = vcmask 261120   ;;  %v1047_v6 = vmov 0  }
  0x14   :  { %v848_v2 = vld [vmem:[#allocation6] sm:$0xff]  ;;  %139 = vmatpush.bf16.msra.mxu0 %v849_v0  ;;  %180 = vmatpush.bf16.msra.mxu1 %v851_v1  ;;  %v850_v3 = vld [vmem:[#allocation8] sm:$0xff]  ;;  %s1049_s24 = smov [#allocation11]   ;;  %s782_s28 = sshll.u32 %s1215_s7, 4  ;;  %s783_s28 = int_to_ptr.hbm [resolvable:$true] %s782_s28 }
  0x15   :  { %v863_v4 = vld [vmem:[%s1212_s4] ss:$0 sm:$0xff]  ;;  %243 = vmatpush.bf16.msra.mxu2 %v851_v1  ;;  %311 = vmatpush.bf16.msra.mxu3 %v851_v1  ;;  %s780_s25 = sshll.u32 %s1049_s24, 4  ;;  %s781_s25 = int_to_ptr.vmem [resolvable:$true] %s780_s25 }
  0x16   :  { %207 = vrot.lane.b32.xlu0 %v863_v4, %s1042_s9  ;;  %v846_v5 = vld [vmem:[#allocation3] sm:$0xff] }
  0x17   :  { %v1122_v11 = vld [vmem:[%s1211_s3] ss:$0 sm:$0xff]  ;;  %s1048_s3 = smov 96  }
  0x18   :  { %140 = vmatpush.bf16.msra.mxu0 %v848_v2  ;;  %181 = vmatpush.bf16.msra.mxu1 %v850_v3 }
  0x19   :  { %244 = vmatpush.bf16.msra.mxu2 %v850_v3  ;;  %312 = vmatpush.bf16.msra.mxu3 %v850_v3 }
  0x1b   :  { %810 = vmatmul.msk.bf16.vlgmr.msra.gmra.mxu0 %vm126_vm0, %v846_v5  ;;  %182 = vmatmul.bf16.vlgmr.msra.gmra.mxu1 %v1047_v6 }
  0x1c   :  { %374 = vmatpush.bf16.msrb.mxu1 %v851_v1  ;;  %573 = vmatpush.bf16.msrb.mxu0 %v851_v1 }
  0x1d   :  { %442 = vmatpush.bf16.msrb.mxu2 %v851_v1  ;;  %505 = vmatpush.bf16.msrb.mxu3 %v851_v1 }
  0x20   :  { %375 = vmatpush.bf16.msrb.mxu1 %v850_v3  ;;  %574 = vmatpush.bf16.msrb.mxu0 %v850_v3 }
  0x21   :  { %443 = vmatpush.bf16.msrb.mxu2 %v850_v3  ;;  %506 = vmatpush.bf16.msrb.mxu3 %v850_v3 }
  0x24   :  { %636 = vmatpush.bf16.msra.mxu1 %v851_v1 }
  0x28   :  { %637 = vmatpush.bf16.msra.mxu1 %v850_v3 }
  0x88   :  { %v1115_v7 = vpop.permute.xlu0 %207 }
  0x98   :  { %v183_v8 = vpop.f32.mrf.mxu1  ;;  %v142_v12 = vpop.f32.mrf.mxu0 }
  0x99   :  { %v210_v9 = vadd.f32 %v1115_v7, %v183_v8  ;;  %v1125_v13 = vadd.f32 %v1122_v11, %v142_v12 }
  0x9b   :  { %212 = vrot.lane.b32.xlu0 %v210_v9, %s1042_s9  ;;  %v187_v14 = vadd.f32 %v183_v8, %v1125_v13 }
  0x9d   :  { %v820_v15 = vmul.f32 -1.442695, %v187_v14 }
  0x9f   :  { %865 = vpow2.f32 %v820_v15 }
  0xa0   :  { %v185_v10 = vpop.f32.mrf.mxu1  ;;  %v144_v14 = vpop.f32.mrf.mxu0 }
  0xa1   :  { %v1144_v15 = vadd.f32 %v1122_v11, %v144_v14 }
  0xa5   :  { %v866_v16 = vpop.eup %865 }
  0xa6   :  { %v191_v17 = vadd.f32 1.0, %v866_v16 }
  0xa8   :  { %867 = vrcp.f32 %v191_v17  ;;  %v203_v23 = vand.u32 2147483648, %v191_v17  ;;  %vm197_vm2 = vweird.f32 %v191_v17  ;;  %v201_v24 = vand.u32 2147483647, %v191_v17 }
  0xaa   :  { %v204_v26 = vor.u32 1.1754944e-38, %v203_v23  ;;  %vm202_vm4 = vcmp.eq.f32.partialorder %v201_v24, 8.507059e+37 }
  0xae   :  { %v868_v18 = vpop.eup %867 }
  0xaf   :  { %v193_v19 = vmul.f32 %v868_v18, %v191_v17  ;;  %vm198_vm1 = vweird.f32 %v868_v18 }
  0xb0   :  { %vm199_vm3 = vmor %vm197_vm2, %vm198_vm1 }
  0xb1   :  { %v194_v20 = vsub.f32 1.0, %v193_v19 }
  0xb3   :  { %v195_v21 = vmul.f32 %v868_v18, %v194_v20 }
  0xb5   :  { %v196_v22 = vadd.f32 %v868_v18, %v195_v21 }
  0xb7   :  { %v200_v25 = vsel %vm199_vm3, %v868_v18, %v196_v22 }
  0xb8   :  { %v205_v28 = vsel %vm202_vm4, %v204_v26, %v200_v25 }
  0xb9   :  { %v222_v33 = vsub.f32 1.0, %v205_v28  ;;  %v228_v35 = vmul.f32 0.0, %v205_v28 }
 0x10d   :  { %v213_v27 = vpop.permute.xlu0 %212 }
 0x10e   :  { %v215_v29 = vmul.f32 %v213_v27, %v205_v28 }
 0x110   :  { %217 = vrot.lane.b32.xlu1 %v215_v29, %s1042_s9 }
 0x182   :  { %v218_v30 = vpop.permute.xlu1 %217 }
 0x183   :  { %v220_v31 = vadd.f32 %v218_v30, %v1125_v13 }
 0x185   :  { %869 = vtanh.f32 %v220_v31 }
 0x18b   :  { %v870_v32 = vpop.eup %869 }
 0x18c   :  { %224 = vrot.lane.b32.xlu1 %v870_v32, %s1048_s3 }
 0x1fe   :  { %v225_v34 = vpop.permute.xlu1 %224 }
 0x1ff   :  { %v227_v36 = vmul.f32 %v225_v34, %v222_v33 }
 0x201   :  { %v229_v37 = vadd.f32 %v228_v35, %v227_v36 }
 0x203   :  { %v230_v38 = vpack.c.bf16 %v229_v37, %v229_v37  ;;  %v293_v57 = vrot.slane %v229_v37, 4 }
 0x205   :  { %232 = vrot.lane.b32.xlu2 %v230_v38, %s1048_s3 }
 0x25f   :  { %v233_v39 = vpop.permute.xlu2 %232 }
 0x260   :  { %821 = vmatmul.msk.bf16.vlgmr.msra.gmra.mxu2 %vm126_vm0, %v233_v39 }
 0x2e3   :  { %v246_v40 = vpop.f32.mrf.mxu2 }
 0x2e4   :  { %v251_v41 = vrot.slane %v246_v40, 4  ;;  %v273_v42 = vadd.f32 %v246_v40, %v1115_v7 }
 0x2e6   :  { %v253_v43 = vadd.f32 %v251_v41, %v1125_v13  ;;  %v275_v44 = vrot.slane %v273_v42, 4 }
 0x2e8   :  { %v822_v45 = vmul.f32 -1.442695, %v253_v43  ;;  %276 = vrot.lane.b32.xlu2 %v275_v44, %s1042_s9 }
 0x2ea   :  { %871 = vpow2.f32 %v822_v45 }
 0x2eb   :  { %v248_v46 = vpop.f32.mrf.mxu2 }
 0x2f0   :  { %v872_v47 = vpop.eup %871 }
 0x2f1   :  { %v257_v48 = vadd.f32 1.0, %v872_v47 }
 0x2f3   :  { %873 = vrcp.f32 %v257_v48  ;;  %v269_v52 = vand.u32 2147483648, %v257_v48  ;;  %v267_v54 = vand.u32 2147483647, %v257_v48  ;;  %vm263_vm6 = vweird.f32 %v257_v48 }
 0x2f5   :  { %v270_v56 = vor.u32 1.1754944e-38, %v269_v52  ;;  %vm268_vm8 = vcmp.eq.f32.partialorder %v267_v54, 8.507059e+37 }
 0x2f9   :  { %v874_v49 = vpop.eup %873 }
 0x2fa   :  { %v259_v50 = vmul.f32 %v874_v49, %v257_v48  ;;  %vm264_vm5 = vweird.f32 %v874_v49 }
 0x2fb   :  { %vm265_vm7 = vmor %vm263_vm6, %vm264_vm5 }
 0x2fc   :  { %v260_v51 = vsub.f32 1.0, %v259_v50 }
 0x2fe   :  { %v261_v53 = vmul.f32 %v874_v49, %v260_v51 }
 0x300   :  { %v262_v55 = vadd.f32 %v874_v49, %v261_v53 }
 0x302   :  { %v266_v58 = vsel %vm265_vm7, %v874_v49, %v262_v55 }
 0x303   :  { %v271_v59 = vsel %vm268_vm8, %v270_v56, %v266_v58 }
 0x304   :  { %v295_v60 = vmul.f32 %v293_v57, %v271_v59  ;;  %v286_v2 = vsub.f32 1.0, %v271_v59 }
 0x342   :  { %v277_v61 = vpop.permute.xlu2 %276 }
 0x343   :  { %v279_v62 = vmul.f32 %v277_v61, %v271_v59 }
 0x345   :  { %281 = vrot.lane.b32.xlu0 %v279_v62, %s1042_s9 }
 0x3b7   :  { %v282_v63 = vpop.permute.xlu0 %281 }
 0x3b8   :  { %v284_v0 = vadd.f32 %v282_v63, %v1125_v13 }
 0x3ba   :  { %875 = vtanh.f32 %v284_v0 }
 0x3c0   :  { %v876_v1 = vpop.eup %875 }
 0x3c1   :  { %288 = vrot.lane.b32.xlu1 %v876_v1, %s1048_s3 }
 0x433   :  { %v289_v3 = vpop.permute.xlu1 %288 }
 0x434   :  { %v291_v4 = vmul.f32 %v289_v3, %v286_v2 }
 0x436   :  { %v296_v5 = vadd.f32 %v295_v60, %v291_v4 }
 0x438   :  { %v297_v6 = vpack.c.bf16 %v296_v5, %v296_v5  ;;  %v357_v35 = vrot.slane %v296_v5, 4 }
 0x43a   :  { %v299_v8 = vrot.slane %v297_v6, 2 }
 0x43c   :  { %300 = vrot.lane.b32.xlu2 %v299_v8, %s1048_s3 }
 0x496   :  { %v301_v9 = vpop.permute.xlu2 %300 }
 0x497   :  { %823 = vmatmul.msk.bf16.vlgmr.msra.gmra.mxu3 %vm126_vm0, %v301_v9 }
 0x51a   :  { %v314_v10 = vpop.f32.mrf.mxu3 }
 0x51b   :  { %v338_v12 = vadd.f32 %v314_v10, %v1115_v7  ;;  %v318_v16 = vadd.f32 %v314_v10, %v1144_v15 }
 0x51d   :  { %340 = vrot.lane.b32.xlu0 %v338_v12, %s1042_s9  ;;  %v824_v17 = vmul.f32 -1.442695, %v318_v16 }
 0x51f   :  { %877 = vpow2.f32 %v824_v17 }
 0x522   :  { %v316_v13 = vpop.f32.mrf.mxu3 }
 0x523   :  { %v847_v13 = vld [vmem:[#allocation3 + $0x8] sm:$0xff] }
 0x524   :  { %811 = vmatmul.msk.bf16.gmra.mxu0 %vm126_vm0, %v847_v13 }
 0x525   :  { %v878_v18 = vpop.eup %877 }
 0x526   :  { %v322_v19 = vadd.f32 1.0, %v878_v18 }
 0x528   :  { %879 = vrcp.f32 %v322_v19  ;;  %v334_v25 = vand.u32 2147483648, %v322_v19  ;;  %vm328_vm10 = vweird.f32 %v322_v19  ;;  %v332_v26 = vand.u32 2147483647, %v322_v19 }
 0x52a   :  { %v335_v28 = vor.u32 1.1754944e-38, %v334_v25  ;;  %vm333_vm12 = vcmp.eq.f32.partialorder %v332_v26, 8.507059e+37 }
 0x52e   :  { %v880_v20 = vpop.eup %879 }
 0x52f   :  { %v324_v21 = vmul.f32 %v880_v20, %v322_v19  ;;  %vm329_vm9 = vweird.f32 %v880_v20 }
 0x530   :  { %vm330_vm11 = vmor %vm328_vm10, %vm329_vm9 }
 0x531   :  { %v325_v22 = vsub.f32 1.0, %v324_v21 }
 0x533   :  { %v326_v23 = vmul.f32 %v880_v20, %v325_v22 }
 0x535   :  { %v327_v24 = vadd.f32 %v880_v20, %v326_v23 }
 0x537   :  { %v331_v27 = vsel %vm330_vm11, %v880_v20, %v327_v24 }
 0x538   :  { %v336_v30 = vsel %vm333_vm12, %v335_v28, %v331_v27 }
 0x539   :  { %v350_v36 = vsub.f32 1.0, %v336_v30  ;;  %v359_v38 = vmul.f32 %v357_v35, %v336_v30 }
 0x58f   :  { %v341_v29 = vpop.permute.xlu0 %340 }
 0x590   :  { %v343_v31 = vmul.f32 %v341_v29, %v336_v30 }
 0x592   :  { %345 = vrot.lane.b32.xlu1 %v343_v31, %s1042_s9 }
 0x604   :  { %v346_v32 = vpop.permute.xlu1 %345 }
 0x605   :  { %v348_v33 = vadd.f32 %v346_v32, %v1144_v15 }
 0x607   :  { %881 = vtanh.f32 %v348_v33 }
 0x60d   :  { %v882_v34 = vpop.eup %881 }
 0x60e   :  { %352 = vrot.lane.b32.xlu2 %v882_v34, %s1048_s3 }
 0x668   :  { %v353_v37 = vpop.permute.xlu2 %352 }
 0x669   :  { %v355_v39 = vmul.f32 %v353_v37, %v350_v36 }
 0x66b   :  { %v360_v40 = vadd.f32 %v359_v38, %v355_v39 }
 0x66d   :  { %v361_v41 = vpack.c.bf16 %v360_v40, %v360_v40  ;;  %v424_v3 = vrot.slane %v360_v40, 4 }
 0x66f   :  { %363 = vrot.lane.b32.xlu0 %v361_v41, %s1048_s3 }
 0x6e1   :  { %v364_v42 = vpop.permute.xlu0 %363 }
 0x6e2   :  { %825 = vmatmul.msk.bf16.vlgmr.msrb.gmra.mxu1 %vm126_vm0, %v364_v42 }
 0x75f   :  { %v377_v43 = vpop.f32.mrf.mxu1 }
 0x760   :  { %v404_v44 = vadd.f32 %v377_v43, %v1115_v7  ;;  %v382_v47 = vrot.slane %v377_v43, 4 }
 0x762   :  { %v406_v45 = vrot.slane %v404_v44, 4  ;;  %v384_v48 = vadd.f32 %v382_v47, %v1144_v15 }
 0x764   :  { %407 = vrot.lane.b32.xlu1 %v406_v45, %s1042_s9  ;;  %v826_v49 = vmul.f32 -1.442695, %v384_v48 }
 0x766   :  { %883 = vpow2.f32 %v826_v49 }
 0x767   :  { %v379_v46 = vpop.f32.mrf.mxu1 }
 0x76c   :  { %v884_v50 = vpop.eup %883 }
 0x76d   :  { %v388_v51 = vadd.f32 1.0, %v884_v50 }
 0x76f   :  { %885 = vrcp.f32 %v388_v51  ;;  %v400_v57 = vand.u32 2147483648, %v388_v51  ;;  %vm394_vm14 = vweird.f32 %v388_v51  ;;  %v398_v58 = vand.u32 2147483647, %v388_v51 }
 0x771   :  { %v401_v60 = vor.u32 1.1754944e-38, %v400_v57  ;;  %vm399_vm1 = vcmp.eq.f32.partialorder %v398_v58, 8.507059e+37 }
 0x775   :  { %v886_v52 = vpop.eup %885 }
 0x776   :  { %v390_v53 = vmul.f32 %v886_v52, %v388_v51  ;;  %vm395_vm13 = vweird.f32 %v886_v52 }
 0x777   :  { %vm396_vm15 = vmor %vm394_vm14, %vm395_vm13 }
 0x778   :  { %v391_v54 = vsub.f32 1.0, %v390_v53 }
 0x77a   :  { %v392_v55 = vmul.f32 %v886_v52, %v391_v54 }
 0x77c   :  { %v393_v56 = vadd.f32 %v886_v52, %v392_v55 }
 0x77e   :  { %v397_v59 = vsel %vm396_vm15, %v886_v52, %v393_v56 }
 0x77f   :  { %v402_v62 = vsel %vm399_vm1, %v401_v60, %v397_v59 }
 0x780   :  { %v417_v4 = vsub.f32 1.0, %v402_v62  ;;  %v426_v6 = vmul.f32 %v424_v3, %v402_v62 }
 0x7d6   :  { %v408_v61 = vpop.permute.xlu1 %407 }
 0x7d7   :  { %v410_v63 = vmul.f32 %v408_v61, %v402_v62 }
 0x7d9   :  { %412 = vrot.lane.b32.xlu2 %v410_v63, %s1042_s9 }
 0x833   :  { %v413_v0 = vpop.permute.xlu2 %412 }
 0x834   :  { %v415_v1 = vadd.f32 %v413_v0, %v1144_v15  ;;  %v147_v15 = vpop.f32.mrf.mxu0 }
 0x835   :  { %v1162_v16 = vadd.f32 %v1122_v11, %v147_v15 }
 0x836   :  { %887 = vtanh.f32 %v415_v1 }
 0x83c   :  { %v888_v2 = vpop.eup %887 }
 0x83d   :  { %419 = vrot.lane.b32.xlu0 %v888_v2, %s1048_s3 }
 0x8af   :  { %v420_v5 = vpop.permute.xlu0 %419 }
 0x8b0   :  { %v422_v8 = vmul.f32 %v420_v5, %v417_v4 }
 0x8b2   :  { %v427_v9 = vadd.f32 %v426_v6, %v422_v8 }
 0x8b4   :  { %v428_v10 = vpack.c.bf16 %v427_v9, %v427_v9  ;;  %v488_v32 = vrot.slane %v427_v9, 4 }
 0x8b6   :  { %v430_v12 = vrot.slane %v428_v10, 2 }
 0x8b8   :  { %431 = vrot.lane.b32.xlu1 %v430_v12, %s1048_s3 }
 0x92a   :  { %v432_v14 = vpop.permute.xlu1 %431 }
 0x92b   :  { %827 = vmatmul.msk.bf16.vlgmr.msrb.gmra.mxu2 %vm126_vm0, %v432_v14 }
 0x9ae   :  { %v445_v17 = vpop.f32.mrf.mxu2 }
 0x9af   :  { %v449_v18 = vadd.f32 %v445_v17, %v1162_v16  ;;  %v469_v19 = vadd.f32 %v445_v17, %v1115_v7 }
 0x9b1   :  { %v828_v20 = vmul.f32 -1.442695, %v449_v18  ;;  %471 = vrot.lane.b32.xlu2 %v469_v19, %s1042_s9  ;;  %v149_v19 = vpop.f32.mrf.mxu0 }
 0x9b3   :  { %889 = vpow2.f32 %v828_v20 }
 0x9b6   :  { %v447_v21 = vpop.f32.mrf.mxu2 }
 0x9b9   :  { %v890_v22 = vpop.eup %889 }
 0x9ba   :  { %v453_v23 = vadd.f32 1.0, %v890_v22  ;;  %v1183_v22 = vadd.f32 %v1122_v11, %v149_v19 }
 0x9bc   :  { %891 = vrcp.f32 %v453_v23  ;;  %v465_v27 = vand.u32 2147483648, %v453_v23  ;;  %v463_v29 = vand.u32 2147483647, %v453_v23  ;;  %vm459_vm3 = vweird.f32 %v453_v23 }
 0x9be   :  { %v466_v31 = vor.u32 1.1754944e-38, %v465_v27  ;;  %vm464_vm5 = vcmp.eq.f32.partialorder %v463_v29, 8.507059e+37 }
 0x9c2   :  { %v892_v24 = vpop.eup %891 }
 0x9c3   :  { %v455_v25 = vmul.f32 %v892_v24, %v453_v23  ;;  %vm460_vm2 = vweird.f32 %v892_v24 }
 0x9c4   :  { %vm461_vm4 = vmor %vm459_vm3, %vm460_vm2 }
 0x9c5   :  { %v456_v26 = vsub.f32 1.0, %v455_v25 }
 0x9c7   :  { %v457_v28 = vmul.f32 %v892_v24, %v456_v26 }
 0x9c9   :  { %v458_v30 = vadd.f32 %v892_v24, %v457_v28 }
 0x9cb   :  { %v462_v33 = vsel %vm461_vm4, %v892_v24, %v458_v30  ;;  %vm762_vm4 = vcmask 9216  }
 0x9cc   :  { %v467_v34 = vsel %vm464_vm5, %v466_v31, %v462_v33 }
 0x9cd   :  { %v490_v35 = vmul.f32 %v488_v32, %v467_v34  ;;  %v481_v41 = vsub.f32 1.0, %v467_v34 }
 0xa0b   :  { %v472_v36 = vpop.permute.xlu2 %471 }
 0xa0c   :  { %v474_v37 = vmul.f32 %v472_v36, %v467_v34 }
 0xa0e   :  { %476 = vrot.lane.b32.xlu0 %v474_v37, %s1042_s9 }
 0xa80   :  { %v477_v38 = vpop.permute.xlu0 %476 }
 0xa81   :  { %v479_v39 = vadd.f32 %v477_v38, %v1162_v16 }
 0xa83   :  { %893 = vtanh.f32 %v479_v39 }
 0xa89   :  { %v894_v40 = vpop.eup %893 }
 0xa8a   :  { %483 = vrot.lane.b32.xlu1 %v894_v40, %s1048_s3 }
 0xafc   :  { %v484_v42 = vpop.permute.xlu1 %483 }
 0xafd   :  { %v486_v43 = vmul.f32 %v484_v42, %v481_v41 }
 0xaff   :  { %v491_v44 = vadd.f32 %v490_v35, %v486_v43 }
 0xb01   :  { %v492_v45 = vpack.c.bf16 %v491_v44, %v491_v44  ;;  %v555_v8 = vrot.slane %v491_v44, 4 }
 0xb03   :  { %494 = vrot.lane.b32.xlu2 %v492_v45, %s1048_s3 }
 0xb5d   :  { %v495_v46 = vpop.permute.xlu2 %494 }
 0xb5e   :  { %829 = vmatmul.msk.bf16.vlgmr.msrb.gmra.mxu3 %vm126_vm0, %v495_v46 }
 0xbe1   :  { %v508_v47 = vpop.f32.mrf.mxu3 }
 0xbe2   :  { %v535_v48 = vadd.f32 %v508_v47, %v1115_v7  ;;  %v513_v51 = vrot.slane %v508_v47, 4 }
 0xbe4   :  { %v537_v49 = vrot.slane %v535_v48, 4  ;;  %v515_v52 = vadd.f32 %v513_v51, %v1162_v16 }
 0xbe6   :  { %538 = vrot.lane.b32.xlu0 %v537_v49, %s1042_s9  ;;  %v830_v53 = vmul.f32 -1.442695, %v515_v52 }
 0xbe8   :  { %895 = vpow2.f32 %v830_v53 }
 0xbe9   :  { %v510_v50 = vpop.f32.mrf.mxu3 }
 0xbee   :  { %v896_v54 = vpop.eup %895 }
 0xbef   :  { %v519_v55 = vadd.f32 1.0, %v896_v54 }
 0xbf1   :  { %897 = vrcp.f32 %v519_v55  ;;  %v531_v61 = vand.u32 2147483648, %v519_v55  ;;  %vm525_vm7 = vweird.f32 %v519_v55  ;;  %v529_v62 = vand.u32 2147483647, %v519_v55 }
 0xbf3   :  { %v532_v0 = vor.u32 1.1754944e-38, %v531_v61  ;;  %vm530_vm9 = vcmp.eq.f32.partialorder %v529_v62, 8.507059e+37 }
 0xbf7   :  { %v898_v56 = vpop.eup %897 }
 0xbf8   :  { %v521_v57 = vmul.f32 %v898_v56, %v519_v55  ;;  %vm526_vm6 = vweird.f32 %v898_v56 }
 0xbf9   :  { %vm527_vm8 = vmor %vm525_vm7, %vm526_vm6 }
 0xbfa   :  { %v522_v58 = vsub.f32 1.0, %v521_v57 }
 0xbfc   :  { %v523_v59 = vmul.f32 %v898_v56, %v522_v58 }
 0xbfe   :  { %v524_v60 = vadd.f32 %v898_v56, %v523_v59 }
 0xc00   :  { %v528_v63 = vsel %vm527_vm8, %v898_v56, %v524_v60 }
 0xc01   :  { %v533_v2 = vsel %vm530_vm9, %v532_v0, %v528_v63 }
 0xc02   :  { %v548_v9 = vsub.f32 1.0, %v533_v2  ;;  %v557_v12 = vmul.f32 %v555_v8, %v533_v2 }
 0xc58   :  { %v539_v1 = vpop.permute.xlu0 %538 }
 0xc59   :  { %v541_v3 = vmul.f32 %v539_v1, %v533_v2 }
 0xc5b   :  { %543 = vrot.lane.b32.xlu1 %v541_v3, %s1042_s9 }
 0xccd   :  { %v544_v4 = vpop.permute.xlu1 %543 }
 0xcce   :  { %v546_v5 = vadd.f32 %v544_v4, %v1162_v16 }
 0xcd0   :  { %899 = vtanh.f32 %v546_v5 }
 0xcd6   :  { %v900_v6 = vpop.eup %899 }
 0xcd7   :  { %550 = vrot.lane.b32.xlu2 %v900_v6, %s1048_s3 }
 0xd31   :  { %v551_v10 = vpop.permute.xlu2 %550 }
 0xd32   :  { %v553_v13 = vmul.f32 %v551_v10, %v548_v9 }
 0xd34   :  { %v558_v14 = vadd.f32 %v557_v12, %v553_v13  ;;  %v853_v12 = vld [vmem:[#allocation9 + $0x8] sm:$0xff]  ;;  %v852_v13 = vld [vmem:[#allocation9] sm:$0xff] }
 0xd35   :  { %720 = vmatpush.bf16.msra.mxu2 %v853_v12 }
 0xd36   :  { %v559_v15 = vpack.c.bf16 %v558_v14, %v558_v14  ;;  %v619_v41 = vrot.slane %v558_v14, 4 }
 0xd38   :  { %v561_v17 = vrot.slane %v559_v15, 2 }
 0xd39   :  { %721 = vmatpush.bf16.msra.mxu2 %v852_v13 }
 0xd3a   :  { %562 = vrot.lane.b32.xlu0 %v561_v17, %s1048_s3 }
 0xdac   :  { %v563_v18 = vpop.permute.xlu0 %562 }
 0xdad   :  { %831 = vmatmul.msk.bf16.vlgmr.msrb.gmra.mxu0 %vm126_vm0, %v563_v18 }
 0xe2a   :  { %v576_v20 = vpop.f32.mrf.mxu0 }
 0xe2b   :  { %v600_v16 = vadd.f32 %v576_v20, %v1115_v7  ;;  %v580_v23 = vadd.f32 %v576_v20, %v1183_v22 }
 0xe2d   :  { %602 = vrot.lane.b32.xlu1 %v600_v16, %s1042_s9  ;;  %v832_v24 = vmul.f32 -1.442695, %v580_v23 }
 0xe2f   :  { %901 = vpow2.f32 %v832_v24 }
 0xe32   :  { %v578_v21 = vpop.f32.mrf.mxu0 }
 0xe35   :  { %v902_v25 = vpop.eup %901 }
 0xe36   :  { %v584_v26 = vadd.f32 1.0, %v902_v25  ;;  %v756_v25 = vlaneseq }
 0xe38   :  { %903 = vrcp.f32 %v584_v26  ;;  %v596_v32 = vand.u32 2147483648, %v584_v26  ;;  %vm590_vm11 = vweird.f32 %v584_v26  ;;  %v594_v33 = vand.u32 2147483647, %v584_v26 }
 0xe3a   :  { %v597_v11 = vor.u32 1.1754944e-38, %v596_v32  ;;  %vm595_vm13 = vcmp.eq.f32.partialorder %v594_v33, 8.507059e+37 }
 0xe3e   :  { %v904_v27 = vpop.eup %903 }
 0xe3f   :  { %v586_v28 = vmul.f32 %v904_v27, %v584_v26  ;;  %vm591_vm10 = vweird.f32 %v904_v27  ;;  %v757_v26 = vshrl.u32 %v756_v25, 7 }
 0xe40   :  { %vm592_vm12 = vmor %vm590_vm11, %vm591_vm10 }
 0xe41   :  { %v587_v29 = vsub.f32 1.0, %v586_v28 }
 0xe43   :  { %v588_v30 = vmul.f32 %v904_v27, %v587_v29 }
 0xe45   :  { %v589_v31 = vadd.f32 %v904_v27, %v588_v30 }
 0xe47   :  { %v593_v34 = vsel %vm592_vm12, %v904_v27, %v589_v31  ;;  %v759_v27 = vand.u32 127, %v756_v25 }
 0xe48   :  { %v598_v36 = vsel %vm595_vm13, %v597_v11, %v593_v34 }
 0xe49   :  { %v612_v42 = vsub.f32 1.0, %v598_v36  ;;  %v621_v44 = vmul.f32 %v619_v41, %v598_v36  ;;  %vm760_vm3 = vcmp.eq.s32.totalorder %v757_v26, %v759_v27 }
 0xe9f   :  { %v603_v35 = vpop.permute.xlu1 %602 }
 0xea0   :  { %v605_v37 = vmul.f32 %v603_v35, %v598_v36  ;;  %v771_v35 = vstv %s1214_s6 }
 0xea2   :  { %607 = vrot.lane.b32.xlu2 %v605_v37, %s1042_s9 }
 0xefc   :  { %v608_v38 = vpop.permute.xlu2 %607 }
 0xefd   :  { %v610_v39 = vadd.f32 %v608_v38, %v1183_v22 }
 0xeff   :  { %905 = vtanh.f32 %v610_v39 }
 0xf05   :  { %v906_v40 = vpop.eup %905 }
 0xf06   :  { %614 = vrot.lane.b32.xlu0 %v906_v40, %s1048_s3 }
 0xf78   :  { %v615_v43 = vpop.permute.xlu0 %614 }
 0xf79   :  { %v617_v45 = vmul.f32 %v615_v43, %v612_v42 }
 0xf7b   :  { %v622_v46 = vadd.f32 %v621_v44, %v617_v45 }
 0xf7d   :  { %v623_v47 = vpack.c.bf16 %v622_v46, %v622_v46  ;;  %v686_v1 = vrot.slane %v622_v46, 4 }
 0xf7f   :  { %625 = vrot.lane.b32.xlu1 %v623_v47, %s1048_s3 }
 0xff1   :  { %v626_v48 = vpop.permute.xlu1 %625 }
 0xff2   :  { %833 = vmatmul.msk.bf16.vlgmr.msra.gmra.mxu1 %vm126_vm0, %v626_v48 }
0x106f   :  { %v639_v49 = vpop.f32.mrf.mxu1 }
0x1070   :  { %v644_v50 = vrot.slane %v639_v49, 4  ;;  %v666_v51 = vadd.f32 %v639_v49, %v1115_v7 }
0x1072   :  { %v646_v52 = vadd.f32 %v644_v50, %v1183_v22  ;;  %v668_v53 = vrot.slane %v666_v51, 4 }
0x1074   :  { %v834_v54 = vmul.f32 -1.442695, %v646_v52  ;;  %669 = vrot.lane.b32.xlu2 %v668_v53, %s1042_s9 }
0x1076   :  { %907 = vpow2.f32 %v834_v54 }
0x1077   :  { %v641_v55 = vpop.f32.mrf.mxu1 }
0x107c   :  { %v908_v56 = vpop.eup %907 }
0x107d   :  { %v650_v57 = vadd.f32 1.0, %v908_v56 }
0x107f   :  { %909 = vrcp.f32 %v650_v57  ;;  %v662_v61 = vand.u32 2147483648, %v650_v57  ;;  %v660_v63 = vand.u32 2147483647, %v650_v57  ;;  %vm656_vm15 = vweird.f32 %v650_v57 }
0x1081   :  { %v663_v7 = vor.u32 1.1754944e-38, %v662_v61  ;;  %vm661_vm2 = vcmp.eq.f32.partialorder %v660_v63, 8.507059e+37 }
0x1085   :  { %v910_v58 = vpop.eup %909 }
0x1086   :  { %v652_v59 = vmul.f32 %v910_v58, %v650_v57  ;;  %vm657_vm14 = vweird.f32 %v910_v58 }
0x1087   :  { %vm658_vm1 = vmor %vm656_vm15, %vm657_vm14 }
0x1088   :  { %v653_v60 = vsub.f32 1.0, %v652_v59 }
0x108a   :  { %v654_v62 = vmul.f32 %v910_v58, %v653_v60 }
0x108c   :  { %v655_v0 = vadd.f32 %v910_v58, %v654_v62 }
0x108e   :  { %v659_v2 = vsel %vm658_vm1, %v910_v58, %v655_v0 }
0x108f   :  { %v664_v3 = vsel %vm661_vm2, %v663_v7, %v659_v2 }
0x1090   :  { %v688_v4 = vmul.f32 %v686_v1, %v664_v3  ;;  %v679_v14 = vsub.f32 1.0, %v664_v3 }
0x10ce   :  { %v670_v5 = vpop.permute.xlu2 %669 }
0x10cf   :  { %v672_v6 = vmul.f32 %v670_v5, %v664_v3 }
0x10d1   :  { %674 = vrot.lane.b32.xlu0 %v672_v6, %s1042_s9 }
0x1143   :  { %v675_v8 = vpop.permute.xlu0 %674 }
0x1144   :  { %v677_v9 = vadd.f32 %v675_v8, %v1183_v22 }
0x1146   :  { %911 = vtanh.f32 %v677_v9 }
0x114c   :  { %v912_v10 = vpop.eup %911 }
0x114d   :  { %681 = vrot.lane.b32.xlu1 %v912_v10, %s1048_s3 }
0x11bf   :  { %v682_v15 = vpop.permute.xlu1 %681 }
0x11c0   :  { %v684_v17 = vmul.f32 %v682_v15, %v679_v14 }
0x11c2   :  { %v689_v18 = vadd.f32 %v688_v4, %v684_v17 }
0x11c4   :  { %v728_v19 = vrot.slane %v689_v18, 6  ;;  %v690_v20 = vpack.c.bf16 %v689_v18, %v689_v18 }
0x11c6   :  { %729 = vrot.lane.b32.xlu0 %v728_v19, %s1048_s3  ;;  %v696_v16 = vrot.slane %v690_v20, 2 }
0x11c8   :  { %697 = vrot.lane.b32.xlu2 %v696_v16, %s1048_s3 }
0x1222   :  { %v698_v21 = vpop.permute.xlu2 %697 }
0x1223   :  { %843 = vmatmul.msk.bf16.vlgmr.msra.gmra.mxu2 %vm126_vm0, %v698_v21 }
0x1238   :  { %v730_v22 = vpop.permute.xlu0 %729 }
0x1239   :  { %844 = vmatpush.xpose.msk.msra.mxu3 %vm126_vm0, %v730_v22 }
0x12a6   :  { %v723_v23 = vpop.f32.mrf.mxu2 }
0x12a7   :  { %845 = vmatmul.msk.f32.vlgmr.msra.gmra.mxu3 %vm126_vm0, %v723_v23  ;;  %vm773_vm0 = vcmask 8192  }
0x12ae   :  { %v725_v24 = vpop.f32.mrf.mxu2 }
0x132a   :  { %v753_v28 = vpop.f32.mrf.mxu3 }
0x132b   :  { %v761_v29 = vsel %vm760_vm3, %v753_v28, 0.0 }
0x132c   :  { %v763_v30 = vsel %vm762_vm4, %v761_v29, 0.0 }
0x132d   :  { %v764_v31 = vrot.slane %v763_v30, 4 }
0x132f   :  { %v765_v32 = vadd.f32 %v764_v31, %v763_v30 }
0x1331   :  { %v766_v33 = vrot.slane %v765_v32, 2 }
0x1333   :  { %v767_v34 = vadd.f32 %v766_v33, %v765_v32 }
0x1335   :  { %v768_v11 = vrot.slane %v767_v34, 1 }
0x1337   :  { %v769_v36 = vadd.f32 %v768_v11, %v767_v34 }
0x1339   :  { %v772_v37 = vadd.f32 %v771_v35, %v769_v36 }
0x133b   :  { %774 = vst.msk [vmem:[#allocation11] sm:$0x1] %vm773_vm0, %v772_v37 }
0x133c   :  { %785 = dma.vmem_to_hbm [thread:$0]  %s781_s25, 16, %s783_s28, [#allocation5]  }
0x133d   :  { %1039 = dma.done.wait [#allocation5], 16  }
0x133e   :  { %1040 = vsyncadd [#allocation5], 4294967280 }
0x133f   :  { %790 = vsyncpa [#allocation4], 1 }
0x1340   :  { %791 = vsyncpa [#allocation7], 1 }
0x1341   :  { %792 = vsyncpa [#allocation10], 1 }
0x1342   :  { %793 = vsyncpa [#allocation5], 1 }

</bundles_post_ra>
